<compile_context>
chip_gen: v5e
topology: v5e:2x2
jax: 0.10.0
libtpu: 0.0.40
codegen_flags: <defaults>
</compile_context>

<pallas_src>
import jax
import jax.numpy as jnp
import numpy as np
from jax.experimental import pallas as pl
from jax.experimental.pallas import tpu as pltpu

MUL_IN_S, MUL_IN_V = 8, 4          # 8x0e + 4x1e
MUL_OUT_S, MUL_OUT_V = 16, 8       # 16x0e + 8x1e
D_IN = MUL_IN_S + 3 * MUL_IN_V     # 20
D_OUT = MUL_OUT_S + 3 * MUL_OUT_V  # 40
EPS = 1e-5


def _project_kernel(xt_ref, wt_ref, b_ref, ot_ref):
    """xt_ref: (D_IN, TN)  wt_ref: (D_OUT, D_IN)  b_ref: (D_OUT, 1)  ot_ref: (D_OUT, TN).

    Computes out^T = W_fold^T @ LN_core(x)^T + b_fold, where W_fold already
    contains the LayerNorm affine (weight/bias) and the kron(W_v, I3) expansion.
    Nodes live on the 128-lane axis -> dense vregs, one unmasked full-tile store.
    """
    x = xt_ref[...].astype(jnp.float32)                 # (20, TN)

    # ---- EquivariantLayerNormV2 core (normalization='component', affine folded) ----
    # scalar (0e) block: rows [0, 8) -- subtract mean over multiplicity, rms-normalize
    xs = x[:MUL_IN_S, :]                                 # (8, TN)
    m = jnp.mean(xs, axis=0, keepdims=True)              # (1, TN)
    var_s = jnp.maximum(jnp.mean(xs * xs, axis=0, keepdims=True) - m * m, 0.0)
    inv_s = jax.lax.rsqrt(var_s + EPS)                   # (1, TN)  (EUP)

    # vector (1e) block: rows [8, 20) -- component norm over all 3*mul entries
    xv = x[MUL_IN_S:, :]                                  # (12, TN)
    inv_v = jax.lax.rsqrt(jnp.mean(xv * xv, axis=0, keepdims=True) + EPS)

    # Per-row mean / inverse-norm (scalar rows get (m, inv_s), vector rows (0, inv_v)).
    row = jax.lax.broadcasted_iota(jnp.int32, x.shape, 0)
    is_scalar = row < MUL_IN_S
    m_full = jnp.where(is_scalar, m, 0.0)                 # (20, TN)
    inv_full = jnp.where(is_scalar, inv_s, inv_v)         # (20, TN)
    x_n = (x - m_full) * inv_full                          # normalized x^T

    # ---- LinearRS (block-diagonal, LN affine + kron(W_v, I3) folded in) ----
    y = jnp.dot(wt_ref[...], x_n, preferred_element_type=jnp.float32) + b_ref[...]
    ot_ref[...] = y.astype(ot_ref.dtype)                  # single dense full-tile store


def project_if_mismatch(x, ln_w_s, ln_b_s, ln_w_v, w_s, b_s, w_v, *, tn=2048):
    """x: (N, D_IN) -> (N, D_OUT).  All parameter folding happens here."""
    n = x.shape[0]
    f32 = jnp.float32

    # ---- fold LayerNorm affine into the equivariant linear ----
    w_s_f = ln_w_s.astype(f32)[:, None] * w_s.astype(f32)              # (8, 16)
    b_s_f = ln_b_s.astype(f32) @ w_s.astype(f32) + b_s.astype(f32)     # (16,)
    w_v_exp = jnp.kron(w_v.astype(f32), jnp.eye(3, dtype=f32))         # (12, 24)
    w_v_f = jnp.repeat(ln_w_v.astype(f32), 3)[:, None] * w_v_exp       # (12, 24)

    # block-diagonal full weight (D_IN, D_OUT) and full bias (D_OUT,)
    w_full = jnp.zeros((D_IN, D_OUT), f32)
    w_full = w_full.at[:MUL_IN_S, :MUL_OUT_S].set(w_s_f)
    w_full = w_full.at[MUL_IN_S:, MUL_OUT_S:].set(w_v_f)
    w_full_t = w_full.T                                                # (40, 20)
    b_full = jnp.concatenate([b_s_f, jnp.zeros((3 * MUL_OUT_V,), f32)])[:, None]  # (40, 1)

    # ---- lane-dense transposed layout: nodes on the 128-lane axis ----
    # tile size: multiple of 128, capped by requested tn and by padded N
    n_pad128 = pl.cdiv(max(n, 1), 128) * 128
    tn = max(128, min((tn // 128) * 128, n_pad128))
    n_pad = pl.cdiv(max(n, 1), tn) * tn

    x_t = x.T                                                          # (20, N)
    if n_pad != n:
        x_t = jnp.pad(x_t, ((0, 0), (0, n_pad - n)))

    out_t = pl.pallas_call(
        _project_kernel,
        out_shape=jax.ShapeDtypeStruct((D_OUT, n_pad), x.dtype),
        grid_spec=pltpu.PrefetchScalarGridSpec(
            num_scalar_prefetch=0,
            grid=(n_pad // tn,),
            in_specs=[
                pl.BlockSpec((D_IN, tn), lambda i: (0, i)),      # x^T tile (dense lanes)
                pl.BlockSpec((D_OUT, D_IN), lambda i: (0, 0)),   # folded W^T (resident)
                pl.BlockSpec((D_OUT, 1), lambda i: (0, 0)),      # folded bias (resident)
            ],
            out_specs=pl.BlockSpec((D_OUT, tn), lambda i: (0, i)),
        ),
        compiler_params=pltpu.CompilerParams(
            dimension_semantics=("parallel",),                   # lets v7x shard over 2 TCs
        ),
    )(x_t, w_full_t, b_full)

    return out_t[:, :n].T                                        # (N, D_OUT)


def reference(x, ln_w_s, ln_b_s, ln_w_v, w_s, b_s, w_v):
    """Pure-JAX reference mirroring EquivariantLayerNormV2 + LinearRS (unfused)."""
    xs = x[:, :MUL_IN_S]
    xs = xs - jnp.mean(xs, axis=-1, keepdims=True)
    norm_s = jnp.mean(xs ** 2, axis=-1, keepdims=True)
    xs = xs * jax.lax.rsqrt(norm_s + EPS) * ln_w_s[None, :] + ln_b_s[None, :]

    xv = x[:, MUL_IN_S:].reshape(-1, MUL_IN_V, 3)
    norm_v = jnp.mean(jnp.mean(xv ** 2, axis=-1), axis=-1, keepdims=True)
    xv = xv * (jax.lax.rsqrt(norm_v + EPS) * ln_w_v[None, :])[:, :, None]

    ys = xs @ w_s + b_s[None, :]
    yv = jnp.einsum("nuc,uw->nwc", xv, w_v).reshape(-1, 3 * MUL_OUT_V)
    return jnp.concatenate([ys, yv], axis=-1)


if __name__ == "__main__":
    key = jax.random.PRNGKey(0)
    k_x, k_ws, k_wv, k_bs, k_lw_s, k_lw_v, k_lb_s = jax.random.split(key, 7)

    # Ragged N (not a multiple of 128) to exercise the padding path.
    N = 300
    x = jax.random.normal(k_x, (N, D_IN), dtype=jnp.float32)

    # Deterministic synthetic parameters.  The e3nn path normalization
    # (1/sqrt(fan_in), absorbed by Equiformer's `rescale`) is folded into the weights.
    w_s = jax.random.normal(k_ws, (MUL_IN_S, MUL_OUT_S), jnp.float32) / np.sqrt(MUL_IN_S)
    w_v = jax.random.normal(k_wv, (MUL_IN_V, MUL_OUT_V), jnp.float32) / np.sqrt(MUL_IN_V)
    b_s = 0.1 * jax.random.normal(k_bs, (MUL_OUT_S,), jnp.float32)
    ln_w_s = 1.0 + 0.1 * jax.random.normal(k_lw_s, (MUL_IN_S,), jnp.float32)
    ln_w_v = 1.0 + 0.1 * jax.random.normal(k_lw_v, (MUL_IN_V,), jnp.float32)
    ln_b_s = 0.1 * jax.random.normal(k_lb_s, (MUL_IN_S,), jnp.float32)

    ref = reference(x, ln_w_s, ln_b_s, ln_w_v, w_s, b_s, w_v)

    # Single-step path (default tile, clamps to padded N).
    out1 = jax.block_until_ready(
        project_if_mismatch(x, ln_w_s, ln_b_s, ln_w_v, w_s, b_s, w_v))
    np.testing.assert_allclose(np.asarray(out1), np.asarray(ref), rtol=2e-2, atol=2e-2)

    # Multi-step parallel grid + ragged padding path (3 steps of 128 lanes).
    out2 = jax.block_until_ready(
        project_if_mismatch(x, ln_w_s, ln_b_s, ln_w_v, w_s, b_s, w_v, tn=128))
    np.testing.assert_allclose(np.asarray(out2), np.asarray(ref), rtol=2e-2, atol=2e-2)

    print("KERNEL_OK")
</pallas_src>

<mosaic_0001>
module attributes {stable_mosaic.version = 11 : i64} {
  func.func @_project_kernel(%arg0: i32, %arg1: memref<20x384xf32, #tpu.memory_space<vmem>>, %arg2: memref<40x20xf32, #tpu.memory_space<vmem>>, %arg3: memref<40x1xf32, #tpu.memory_space<vmem>>, %arg4: memref<40x384xf32, #tpu.memory_space<vmem>>) attributes {dimension_semantics = [#tpu.dimension_semantics<parallel>], iteration_bounds = array<i64: 1>, scalar_prefetch = 0 : i64, scratch_operands = 0 : i64, tpu.core_type = #tpu.core_type<tc>, window_params = [{transform_indices = @transform_0, window_bounds = array<i64: 20, 384>}, {pipeline_mode = #tpu.pipeline_mode<synchronous>, transform_indices = @transform_1, window_bounds = array<i64: 40, 20>}, {pipeline_mode = #tpu.pipeline_mode<synchronous>, transform_indices = @transform_2, window_bounds = array<i64: 40, 1>}, {transform_indices = @transform_3, window_bounds = array<i64: 40, 384>}]} {
    %c0 = arith.constant 0 : index
    %c0_0 = arith.constant 0 : index
    %0 = vector.load %arg1[%c0, %c0_0] : memref<20x384xf32, #tpu.memory_space<vmem>>, vector<20x384xf32>
    %1 = vector.extract_strided_slice %0 {offsets = [0, 0], sizes = [8, 384], strides = [1, 1]} : vector<20x384xf32> to vector<8x384xf32>
    %cst = arith.constant dense<0.000000e+00> : vector<384xf32>
    %2 = vector.multi_reduction <add>, %1, %cst [0] : vector<8x384xf32> to vector<384xf32>
    %3 = vector.shape_cast %2 : vector<384xf32> to vector<1x384xf32>
    %cst_1 = arith.constant 8.000000e+00 : f32
    %4 = vector.broadcast %cst_1 : f32 to vector<1x384xf32>
    %5 = arith.divf %3, %4 : vector<1x384xf32>
    %6 = arith.mulf %1, %1 : vector<8x384xf32>
    %cst_2 = arith.constant dense<0.000000e+00> : vector<384xf32>
    %7 = vector.multi_reduction <add>, %6, %cst_2 [0] : vector<8x384xf32> to vector<384xf32>
    %8 = vector.shape_cast %7 : vector<384xf32> to vector<1x384xf32>
    %cst_3 = arith.constant 8.000000e+00 : f32
    %9 = vector.broadcast %cst_3 : f32 to vector<1x384xf32>
    %10 = arith.divf %8, %9 : vector<1x384xf32>
    %11 = arith.mulf %5, %5 : vector<1x384xf32>
    %12 = arith.subf %10, %11 : vector<1x384xf32>
    %cst_4 = arith.constant 0.000000e+00 : f32
    %13 = vector.broadcast %cst_4 : f32 to vector<1x384xf32>
    %14 = arith.maximumf %12, %13 : vector<1x384xf32>
    %cst_5 = arith.constant 9.99999974E-6 : f32
    %15 = vector.broadcast %cst_5 : f32 to vector<1x384xf32>
    %16 = arith.addf %14, %15 : vector<1x384xf32>
    %17 = math.rsqrt %16 : vector<1x384xf32>
    %18 = vector.extract_strided_slice %0 {offsets = [8, 0], sizes = [12, 384], strides = [1, 1]} : vector<20x384xf32> to vector<12x384xf32>
    %19 = arith.mulf %18, %18 : vector<12x384xf32>
    %cst_6 = arith.constant dense<0.000000e+00> : vector<384xf32>
    %20 = vector.multi_reduction <add>, %19, %cst_6 [0] : vector<12x384xf32> to vector<384xf32>
    %21 = vector.shape_cast %20 : vector<384xf32> to vector<1x384xf32>
    %cst_7 = arith.constant 1.200000e+01 : f32
    %22 = vector.broadcast %cst_7 : f32 to vector<1x384xf32>
    %23 = arith.divf %21, %22 : vector<1x384xf32>
    %cst_8 = arith.constant 9.99999974E-6 : f32
    %24 = vector.broadcast %cst_8 : f32 to vector<1x384xf32>
    %25 = arith.addf %23, %24 : vector<1x384xf32>
    %26 = math.rsqrt %25 : vector<1x384xf32>
    %27 = tpu.iota {dimensions = array<i32: 0>} : vector<20x384xi32>
    %c8_i32 = arith.constant 8 : i32
    %28 = vector.broadcast %c8_i32 : i32 to vector<20x384xi32>
    %29 = arith.cmpi slt, %27, %28 : vector<20x384xi32>
    %cst_9 = arith.constant 0.000000e+00 : f32
    %30 = vector.shape_cast %5 : vector<1x384xf32> to vector<1x384xf32>
    %31 = vector.broadcast %30 : vector<1x384xf32> to vector<20x384xf32>
    %32 = vector.broadcast %cst_9 : f32 to vector<20x384xf32>
    %33 = arith.select %29, %31, %32 : vector<20x384xi1>, vector<20x384xf32>
    %34 = vector.shape_cast %17 : vector<1x384xf32> to vector<1x384xf32>
    %35 = vector.broadcast %34 : vector<1x384xf32> to vector<20x384xf32>
    %36 = vector.shape_cast %26 : vector<1x384xf32> to vector<1x384xf32>
    %37 = vector.broadcast %36 : vector<1x384xf32> to vector<20x384xf32>
    %38 = arith.select %29, %35, %37 : vector<20x384xi1>, vector<20x384xf32>
    %39 = arith.subf %0, %33 : vector<20x384xf32>
    %40 = arith.mulf %39, %38 : vector<20x384xf32>
    %c0_10 = arith.constant 0 : index
    %c0_11 = arith.constant 0 : index
    %41 = vector.load %arg2[%c0_10, %c0_11] : memref<40x20xf32, #tpu.memory_space<vmem>>, vector<40x20xf32>
    %cst_12 = arith.constant dense<0.000000e+00> : vector<40x384xf32>
    %42 = tpu.matmul %41, %40, %cst_12 {dimension_numbers = #tpu.dot_dimension_numbers<[1], [0], [0], [1], [0, 0, 1, 1], [], []>} : vector<40x20xf32>, vector<20x384xf32>, vector<40x384xf32> -> vector<40x384xf32>
    %c0_13 = arith.constant 0 : index
    %c0_14 = arith.constant 0 : index
    %43 = vector.load %arg3[%c0_13, %c0_14] : memref<40x1xf32, #tpu.memory_space<vmem>>, vector<40x1xf32>
    %44 = vector.broadcast %43 : vector<40x1xf32> to vector<40x384xf32>
    %45 = arith.addf %42, %44 : vector<40x384xf32>
    %c0_15 = arith.constant 0 : index
    %c0_16 = arith.constant 0 : index
    %46 = vector.load %arg4[%c0_15, %c0_16] : memref<40x384xf32, #tpu.memory_space<vmem>>, vector<40x384xf32>
    tpu.vector_store %arg4[%c0_15, %c0_16], %45 {strides = array<i32>} : memref<40x384xf32, #tpu.memory_space<vmem>>, vector<40x384xf32>,
    return
  }
  func.func @transform_0(%arg0: i32) -> (i32, i32) {
    %c0_i32 = arith.constant 0 : i32
    %c0_i32_0 = arith.constant 0 : i32
    return %c0_i32, %arg0 : i32, i32
  }
  func.func @transform_1(%arg0: i32) -> (i32, i32) {
    %c0_i32 = arith.constant 0 : i32
    %c0_i32_0 = arith.constant 0 : i32
    %c0_i32_1 = arith.constant 0 : i32
    return %c0_i32, %c0_i32_0 : i32, i32
  }
  func.func @transform_2(%arg0: i32) -> (i32, i32) {
    %c0_i32 = arith.constant 0 : i32
    %c0_i32_0 = arith.constant 0 : i32
    %c0_i32_1 = arith.constant 0 : i32
    return %c0_i32, %c0_i32_0 : i32, i32
  }
  func.func @transform_3(%arg0: i32) -> (i32, i32) {
    %c0_i32 = arith.constant 0 : i32
    %c0_i32_0 = arith.constant 0 : i32
    return %c0_i32, %arg0 : i32, i32
  }
}

</mosaic_0001>

<bundles_post_ra>
// kernel: tpu_custom_call.1
= control target key start
LH: loop header
LB: loop body
LE: loop exit
PB: predicated region body
PF: predicated region fallthrough
CT: control target
= control target key end

     0   :  { %vm124_vm0 = vcmask 1043456   ;;  %v502_v5 = vmov 12.0   ;;  %v503_v15 = vmov 8.0   ;;  %s733_s0 = inlined_call_operand.vmem [shape: f32[20,384], index: 0, kind: input, shape index: {}]   ;;  %s734_s1 = inlined_call_operand.vmem [shape: f32[40,20], index: 1, kind: input, shape index: {}]   ;;  %s735_s2 = inlined_call_operand.vmem [shape: f32[40,1], index: 2, kind: input, shape index: {}]   ;;  %s736_s3 = inlined_call_operand.hbm [shape: f32[40,384], index: 3, kind: output, shape index: {}]  }
   0x1   :  { %v531_v0 = vld [vmem:[%s733_s0 + $0x18] sm:$0xff]  ;;  %v536_v1 = vld [vmem:[%s733_s0 + $0x30] sm:$0xf]  ;;  %v541_v2 = vld [vmem:[%s733_s0 + $0x28] sm:$0xff]  ;;  %460 = vrcp.f32 %v502_v5 }
   0x2   :  { %v118_v3 = vmul.f32 %v531_v0, %v531_v0  ;;  %v121_v4 = vmul.f32 %v536_v1, %v536_v1  ;;  %v550_v6 = vld [vmem:[%s733_s0 + $0x40] sm:$0xf]  ;;  %v120_v7 = vmul.f32 %v541_v2, %v541_v2  ;;  %v562_v9 = vld [vmem:[%s733_s0 + $0x10] sm:$0xff]  ;;  %462 = vrcp.f32 %v503_v15  ;;  %v581_v18 = vld [vmem:[%s733_s0 + $0x38] sm:$0xf] }
   0x3   :  { %v557_v8 = vld [vmem:[%s733_s0] sm:$0xff]  ;;  %v123_v10 = vmul.f32 %v550_v6, %v550_v6  ;;  %v36_v16 = vrot.slane %v562_v9, 4  ;;  %v54_v17 = vmul.f32 %v562_v9, %v562_v9 }
   0x4   :  { %v24_v11 = vrot.slane %v557_v8, 4  ;;  %v52_v12 = vmul.f32 %v557_v8, %v557_v8  ;;  %v572_v13 = vld [vmem:[%s733_s0 + $0x20] sm:$0xff]  ;;  %v125_v14 = vsel %vm124_vm0, %v121_v4, 0.0 }
   0x5   :  { %8 = vsyncpa [#allocation3], 0  ;;  %v126_v19 = vadd.f32 %v125_v14, %v118_v3  ;;  %v141_v20 = vsel %vm124_vm0, %v123_v10, 0.0  ;;  %v588_v23 = vld [vmem:[%s733_s0 + $0x8] sm:$0xff]  ;;  %v37_v25 = vadd.f32 %v36_v16, %v562_v9  ;;  %v67_v26 = vrot.slane %v54_v17, 4  ;;  %s412_s24 = sshll.u32 %s736_s3, 4  ;;  %s413_s24 = int_to_ptr.hbm [resolvable:$true] %s412_s24 }
   0x6   :  { %v25_v21 = vadd.f32 %v24_v11, %v557_v8  ;;  %v55_v22 = vrot.slane %v52_v12, 4  ;;  %v142_v24 = vadd.f32 %v141_v20, %v120_v7  ;;  %v119_v27 = vmul.f32 %v572_v13, %v572_v13  ;;  %s506_s25 = smov 384   ;;  %s507_s26 = smov 24  }
   0x7   :  { %v127_v28 = vrot.slane %v126_v19, 4  ;;  %v122_v31 = vmul.f32 %v581_v18, %v581_v18  ;;  %v461_v32 = vpop.eup %460  ;;  %v38_v34 = vrot.slane %v37_v25, 2  ;;  %v68_v35 = vadd.f32 %v67_v26, %v54_v17 }
   0x8   :  { %v26_v29 = vrot.slane %v25_v21, 2  ;;  %v56_v30 = vadd.f32 %v55_v22, %v52_v12  ;;  %v143_v33 = vrot.slane %v142_v24, 4  ;;  %v30_v36 = vrot.slane %v588_v23, 4  ;;  %v463_v40 = vpop.eup %462 }
   0x9   :  { %v128_v37 = vadd.f32 %v127_v28, %v126_v19  ;;  %v150_v38 = vmul.f32 12.0, %v461_v32  ;;  %vm154_vm1 = vweird.f32 %v461_v32  ;;  %v39_v43 = vadd.f32 %v38_v34, %v37_v25 }
   0xa   :  { %v27_v39 = vadd.f32 %v26_v29, %v25_v21  ;;  %v144_v41 = vadd.f32 %v143_v33, %v142_v24  ;;  %v57_v42 = vrot.slane %v56_v30, 2  ;;  %v69_v44 = vrot.slane %v68_v35, 2 }
   0xb   :  { %v129_v45 = vrot.slane %v128_v37, 2  ;;  %v151_v46 = vsub.f32 1.0, %v150_v38  ;;  %v43_v48 = vmul.f32 8.0, %v463_v40  ;;  %vm47_vm2 = vweird.f32 %v463_v40 }
   0xc   :  { %v28_v47 = vrot.slane %v27_v39, 1  ;;  %v145_v49 = vrot.slane %v144_v41, 2  ;;  %v58_v50 = vadd.f32 %v57_v42, %v56_v30  ;;  %v40_v51 = vrot.slane %v39_v43, 1 }
   0xd   :  { %v130_v52 = vadd.f32 %v129_v45, %v128_v37  ;;  %v152_v53 = vmul.f32 %v461_v32, %v151_v46  ;;  %v44_v55 = vsub.f32 1.0, %v43_v48  ;;  %v70_v59 = vadd.f32 %v69_v44, %v68_v35 }
   0xe   :  { %v29_v54 = vadd.f32 %v28_v47, %v27_v39  ;;  %v146_v56 = vadd.f32 %v145_v49, %v144_v41  ;;  %v59_v57 = vrot.slane %v58_v50, 1  ;;  %v41_v58 = vadd.f32 %v40_v51, %v39_v43 }
   0xf   :  { %v131_v60 = vrot.slane %v130_v52, 1  ;;  %v153_v61 = vadd.f32 %v461_v32, %v152_v53  ;;  %v45_v62 = vmul.f32 %v463_v40, %v44_v55  ;;  %v133_v63 = vsel %vm124_vm0, %v122_v31, 0.0 }
  0x10   :  { %v147_v3 = vrot.slane %v146_v56, 1  ;;  %v60_v4 = vadd.f32 %v59_v57, %v58_v50  ;;  %v71_v5 = vrot.slane %v70_v59, 1  ;;  %v134_v7 = vadd.f32 %v133_v63, %v119_v27  ;;  %v240_v63 = vld [vmem:[%s735_s2] sm:$0xff] }
  0x11   :  { %v132_v10 = vadd.f32 %v131_v60, %v130_v52  ;;  %v155_v11 = vsel %vm154_vm1, %v461_v32, %v153_v61  ;;  %v46_v12 = vadd.f32 %v463_v40, %v45_v62  ;;  %v31_v14 = vadd.f32 %v30_v36, %v588_v23 }
  0x12   :  { %v148_v15 = vadd.f32 %v147_v3, %v146_v56  ;;  %v72_v16 = vadd.f32 %v71_v5, %v70_v59  ;;  %v135_v17 = vrot.slane %v134_v7, 4  ;;  %v53_v22 = vmul.f32 %v588_v23, %v588_v23 }
  0x13   :  { %v156_v19 = vmul.f32 %v155_v11, %v132_v10  ;;  %v600_v20 = vsel %vm47_vm2, %v463_v40, %v46_v12  ;;  %v32_v21 = vrot.slane %v31_v14, 2  ;;  %v504_v10 = vmov 0  }
  0x14   :  { %v158_v24 = vmul.f32 %v155_v11, %v148_v15  ;;  %v605_v25 = vmul.f32 %v600_v20, %v29_v54  ;;  %v73_v26 = vmul.f32 %v60_v4, %v600_v20  ;;  %v609_v27 = vmul.f32 %v600_v20, %v41_v58  ;;  %457 = vset.pattern.permute.xlu0 %v504_v10 }
  0x15   :  { %v159_v28 = vadd.f32 1e-05, %v156_v19  ;;  %v75_v29 = vmul.f32 %v72_v16, %v600_v20  ;;  %v136_v30 = vadd.f32 %v135_v17, %v134_v7  ;;  %v33_v31 = vadd.f32 %v32_v21, %v31_v14  ;;  %458 = vset.pattern.permute.xlu1 %v504_v10  ;;  %247 = vperm.xlu0 %457, %v240_v63  }
  0x16   :  { %v161_v32 = vadd.f32 1e-05, %v158_v24  ;;  %v76_v33 = vmul.f32 %v605_v25, %v605_v25  ;;  %v78_v34 = vmul.f32 %v609_v27, %v609_v27  ;;  %v61_v40 = vrot.slane %v53_v22, 4  ;;  %459 = vset.pattern.permute.xlu2 %v504_v10 }
  0x17   :  { %464 = vrsqrt.f32 %v159_v28  ;;  %v137_v35 = vrot.slane %v136_v30, 2  ;;  %v34_v39 = vrot.slane %v33_v31, 1  ;;  %vm168_vm3 = vweird.f32 %v159_v28 }
  0x18   :  { %466 = vrsqrt.f32 %v161_v32  ;;  %v79_v36 = vsub.f32 %v73_v26, %v76_v33  ;;  %v81_v37 = vsub.f32 %v75_v29, %v78_v34  ;;  %v62_v44 = vadd.f32 %v61_v40, %v53_v22 }
  0x19   :  { %v138_v38 = vadd.f32 %v137_v35, %v136_v30  ;;  %v35_v47 = vadd.f32 %v34_v39, %v33_v31  ;;  %vm188_vm5 = vweird.f32 %v161_v32  ;;  %vm270_vm2 = vcmask 162816  }
  0x1a   :  { %v82_v41 = vmax.f32 %v79_v36, 0.0  ;;  %v84_v42 = vmax.f32 %v81_v37, 0.0  ;;  %v63_v50 = vrot.slane %v62_v44, 2 }
  0x1b   :  { %v139_v43 = vrot.slane %v138_v38, 1  ;;  %v623_v56 = vmul.f32 %v600_v20, %v35_v47  ;;  %v235_v47 = vld [vmem:[%s734_s1] sm:$0xff] }
  0x1c   :  { %v616_v45 = vadd.f32 1e-05, %v82_v41  ;;  %v618_v46 = vadd.f32 1e-05, %v84_v42  ;;  %v64_v57 = vadd.f32 %v63_v50, %v62_v44  ;;  %v219_v41 = vsub.f32 %v562_v9, %v609_v27  ;;  %v236_v9 = vld [vmem:[%s734_s1 + $0x8] sm:$0xff] }
  0x1d   :  { %v465_v48 = vpop.eup %464  ;;  %v140_v49 = vadd.f32 %v139_v43, %v138_v38  ;;  %v77_v7 = vmul.f32 %v623_v56, %v623_v56 }
  0x1e   :  { %v467_v51 = vpop.eup %466  ;;  %v163_v52 = vmul.f32 %v465_v48, %v159_v28  ;;  %468 = vrsqrt.f32 %v616_v45  ;;  %vm169_vm4 = vweird.f32 %v465_v48  ;;  %v65_v61 = vrot.slane %v64_v57, 1 }
  0x1f   :  { %v183_v53 = vmul.f32 %v467_v51, %v161_v32  ;;  %470 = vrsqrt.f32 %v618_v46  ;;  %v157_v55 = vmul.f32 %v155_v11, %v140_v49  ;;  %vm189_vm6 = vweird.f32 %v467_v51  ;;  %vm170_vm7 = vmor %vm168_vm3, %vm169_vm4  ;;  %v242_v49 = vld [vmem:[%s735_s2 + $0x10] sm:$0xff] }
  0x20   :  { %v164_v54 = vmul.f32 %v465_v48, %v163_v52  ;;  %v66_v5 = vadd.f32 %v65_v61, %v64_v57  ;;  %vm190_vm8 = vmor %vm188_vm5, %vm189_vm6  ;;  %vm94_vm9 = vweird.f32 %v616_v45  ;;  %vm114_vm11 = vweird.f32 %v618_v46  ;;  %257 = vperm.xlu1 %458, %v242_v49   ;;  %v237_v57 = vld [vmem:[%s734_s1 + $0x10] sm:$0xff] }
  0x21   :  { %v184_v58 = vmul.f32 %v467_v51, %v183_v53  ;;  %v625_v60 = vadd.f32 1e-05, %v157_v55 }
  0x22   :  { %v165_v59 = vmul.f32 0.5, %v164_v54  ;;  %v74_v17 = vmul.f32 %v66_v5, %v600_v20 }
  0x23   :  { %v185_v62 = vmul.f32 0.5, %v184_v58  ;;  %472 = vrsqrt.f32 %v625_v60  ;;  %vm178_vm15 = vweird.f32 %v625_v60 }
  0x24   :  { %v469_v3 = vpop.eup %468  ;;  %v166_v4 = vsub.f32 1.5, %v165_v59  ;;  %v80_v26 = vsub.f32 %v74_v17, %v77_v7 }
  0x25   :  { %v471_v11 = vpop.eup %470  ;;  %v186_v12 = vsub.f32 1.5, %v185_v62  ;;  %v89_v14 = vmul.f32 %v469_v3, %v616_v45  ;;  %vm95_vm10 = vweird.f32 %v469_v3 }
  0x26   :  { %v167_v15 = vmul.f32 %v465_v48, %v166_v4  ;;  %v109_v16 = vmul.f32 %v471_v11, %v618_v46  ;;  %vm115_vm12 = vweird.f32 %v471_v11  ;;  %v83_v35 = vmax.f32 %v80_v26, 0.0  ;;  %vm661_vm13 = vmor %vm94_vm9, %vm95_vm10 }
  0x27   :  { %v187_v19 = vmul.f32 %v467_v51, %v186_v12  ;;  %v90_v21 = vmul.f32 %v469_v3, %v89_v14  ;;  %vm670_vm14 = vmor %vm114_vm11, %vm115_vm12 }
  0x28   :  { %v171_v22 = vsel %vm170_vm7, %v465_v48, %v167_v15  ;;  %v110_v24 = vmul.f32 %v471_v11, %v109_v16  ;;  %v86_v38 = vadd.f32 1e-05, %v83_v35 }
  0x29   :  { %v232_v28 = vmul.f32 %v171_v22, %v536_v1  ;;  %v191_v29 = vsel %vm190_vm8, %v467_v51, %v187_v19  ;;  %v229_v30 = vmul.f32 %v171_v22, %v531_v0  ;;  %v91_v31 = vmul.f32 0.5, %v90_v21  ;;  %v473_v32 = vpop.eup %472  ;;  %v241_v0 = vld [vmem:[%s735_s2 + $0x8] sm:$0xff] }
  0x2a   :  { %v645_v33 = vmul.f32 %v191_v29, %v550_v6  ;;  %v648_v20 = vmul.f32 %v191_v29, %v541_v2  ;;  %v111_v34 = vmul.f32 0.5, %v110_v24  ;;  %v173_v1 = vmul.f32 %v473_v32, %v625_v60  ;;  %252 = vperm.xlu0 %457, %v241_v0  }
  0x2b   :  { %442 = vmatpush.msk.msra.mxu3 %vm124_vm0, %v232_v28  ;;  %v92_v36 = vsub.f32 1.5, %v91_v31  ;;  %424 = vmatpush.msk.msra.mxu0 %vm124_vm0, %v232_v28  ;;  %v217_v6 = vsub.f32 %v557_v8, %v605_v25  ;;  %474 = vrsqrt.f32 %v86_v38  ;;  %vm179_vm1 = vweird.f32 %v473_v32 }
  0x2c   :  { %448 = vmatpush.msk.msra.mxu2 %vm124_vm0, %v645_v33  ;;  %v112_v37 = vsub.f32 1.5, %v111_v34  ;;  %v174_v42 = vmul.f32 %v473_v32, %v173_v1  ;;  %vm180_vm3 = vmor %vm178_vm15, %vm179_vm1  ;;  %vm104_vm4 = vweird.f32 %v86_v38  ;;  %v218_v60 = vsub.f32 %v588_v23, %v623_v56  ;;  %v239_v23 = vld [vmem:[%s734_s1 + $0x20] sm:$0xff] }
  0x2d   :  { %443 = vmatpush.msra.mxu3 %v229_v30  ;;  %v93_v39 = vmul.f32 %v469_v3, %v92_v36  ;;  %309 = vmatpush.msra.mxu0 %v229_v30 }
  0x2e   :  { %449 = vmatpush.msra.mxu2 %v648_v20  ;;  %v113_v43 = vmul.f32 %v471_v11, %v112_v37  ;;  %v175_v25 = vmul.f32 0.5, %v174_v42 }
  0x2f   :  { %v97_v8 = vsel %vm661_vm13, %v469_v3, %v93_v39  ;;  %v238_v3 = vld [vmem:[%s734_s1 + $0x18] sm:$0xff]  ;;  %s505_s1 = smov [#allocation2]  }
  0x30   :  { %v226_v44 = vmul.f32 %v217_v6, %v97_v8  ;;  %v117_v45 = vsel %vm670_vm14, %v471_v11, %v113_v43  ;;  %v176_v46 = vsub.f32 1.5, %v175_v25  ;;  %s410_s21 = sshll.u32 %s505_s1, 4  ;;  %s411_s21 = int_to_ptr.vmem [resolvable:$true] %s410_s21 }
  0x31   :  { %v228_v27 = vmul.f32 %v219_v41, %v117_v45  ;;  %v475_v50 = vpop.eup %474 }
  0x32   :  { %444 = vmatpush.msra.mxu3 %v226_v44  ;;  %310 = vmatpush.msra.mxu0 %v226_v44  ;;  %v177_v48 = vmul.f32 %v473_v32, %v176_v46  ;;  %v99_v52 = vmul.f32 %v475_v50, %v86_v38  ;;  %vm105_vm5 = vweird.f32 %v475_v50 }
  0x33   :  { %450 = vmatpush.msra.mxu2 %v228_v27  ;;  %426 = vmatmul.msk.f32.vlgmr.msra.gmra.mxu3 %vm270_vm2, %v236_v9  ;;  %vm106_vm6 = vmor %vm104_vm4, %vm105_vm5 }
  0x34   :  { %438 = vmatmul.msk.f32.vlgmr.msra.gmra.mxu2 %vm270_vm2, %v236_v9  ;;  %425 = vmatmul.msk.f32.vlgmr.msra.gmra.mxu0 %vm270_vm2, %v235_v47  ;;  %v181_v51 = vsel %vm180_vm3, %v473_v32, %v177_v48  ;;  %v100_v55 = vmul.f32 %v475_v50, %v99_v52 }
  0x35   :  { %v233_v53 = vmul.f32 %v181_v51, %v581_v18  ;;  %v230_v54 = vmul.f32 %v181_v51, %v572_v13  ;;  %v243_v13 = vld [vmem:[%s735_s2 + $0x18] sm:$0xff]  ;;  %v244_v18 = vld [vmem:[%s735_s2 + $0x20] sm:$0xff] }
  0x36   :  { %v101_v58 = vmul.f32 0.5, %v100_v55  ;;  %267 = vperm.xlu2 %459, %v244_v18   ;;  %262 = vperm.xlu1 %458, %v243_v13  }
  0x37   :  { %445 = vmatpush.msk.msra.mxu1 %vm124_vm0, %v233_v53  ;;  %430 = vmatpush.msk.msrb.mxu0 %vm124_vm0, %v233_v53 }
  0x38   :  { %v102_v59 = vsub.f32 1.5, %v101_v58 }
  0x39   :  { %446 = vmatpush.msra.mxu1 %v230_v54  ;;  %341 = vmatpush.msrb.mxu0 %v230_v54 }
  0x3a   :  { %v103_v61 = vmul.f32 %v475_v50, %v102_v59 }
  0x3b   :  { %427 = vmatmul.msk.f32.gmra.mxu3 %vm270_vm2, %v237_v57 }
  0x3c   :  { %439 = vmatmul.msk.f32.gmra.mxu2 %vm270_vm2, %v237_v57  ;;  %v107_v62 = vsel %vm106_vm6, %v475_v50, %v103_v61 }
  0x3d   :  { %v227_v63 = vmul.f32 %v218_v60, %v107_v62 }
  0x3f   :  { %447 = vmatpush.msra.mxu1 %v227_v63  ;;  %342 = vmatpush.msrb.mxu0 %v227_v63 }
  0x40   :  { %432 = vmatmul.msk.f32.vlgmr.msra.gmra.mxu1 %vm270_vm2, %v236_v9  ;;  %431 = vmatmul.msk.f32.vlgmr.msrb.gmra.mxu0 %vm270_vm2, %v235_v47 }
  0x41   :  { %436 = vmatpush.msk.msra.mxu0 %vm124_vm0, %v645_v33 }
  0x43   :  { %428 = vmatmul.msk.f32.gmra.mxu3 %vm270_vm2, %v238_v3  ;;  %373 = vmatpush.msra.mxu0 %v648_v20 }
  0x44   :  { %440 = vmatmul.msk.f32.gmra.mxu2 %vm270_vm2, %v238_v3 }
  0x45   :  { %374 = vmatpush.msra.mxu0 %v228_v27 }
  0x48   :  { %433 = vmatmul.msk.f32.gmra.mxu1 %vm270_vm2, %v237_v57  ;;  %437 = vmatmul.msk.f32.vlgmr.msra.gmra.mxu0 %vm270_vm2, %v235_v47 }
  0x4b   :  { %429 = vmatmul.msk.f32.gmra.mxu3 %vm270_vm2, %v239_v23 }
  0x4c   :  { %441 = vmatmul.msk.f32.gmra.mxu2 %vm270_vm2, %v239_v23 }
  0x50   :  { %434 = vmatmul.msk.f32.gmra.mxu1 %vm270_vm2, %v238_v3 }
  0x58   :  { %435 = vmatmul.msk.f32.gmra.mxu1 %vm270_vm2, %v239_v23 }
  0x87   :  { %v248_v56 = vpop.permute.xlu0 %247 }
  0x90   :  { %v268_v1 = vpop.permute.xlu2 %267 }
  0x92   :  { %v258_v15 = vpop.permute.xlu1 %257 }
  0x9c   :  { %v253_v7 = vpop.permute.xlu0 %252 }
  0xa8   :  { %v263_v29 = vpop.permute.xlu1 %262 }
  0xb1   :  { %v312_v4 = vpop.f32.mrf.mxu0 }
  0xb2   :  { %v313_v5 = vadd.f32 %v312_v4, %v248_v56 }
  0xb4   :  { %391 = vst [vmem:[#allocation2] sm:$0xff] %v313_v5 }
  0xb6   :  { %v315_v10 = vpop.f32.mrf.mxu3 }
  0xb7   :  { %v316_v11 = vadd.f32 %v315_v10, %v253_v7  ;;  %v379_v12 = vpop.f32.mrf.mxu2 }
  0xb8   :  { %v380_v14 = vadd.f32 %v379_v12, %v253_v7 }
  0xb9   :  { %394 = vst [vmem:[#allocation2 + $0x18] sm:$0xff] %v316_v11 }
  0xba   :  { %396 = vst [vmem:[#allocation2 + $0x28] sm:$0xff] %v380_v14 }
  0xbd   :  { %v347_v21 = vpop.f32.mrf.mxu1  ;;  %v344_v22 = vpop.f32.mrf.mxu0 }
  0xbe   :  { %v318_v16 = vpop.f32.mrf.mxu3  ;;  %v348_v26 = vadd.f32 %v347_v21, %v253_v7  ;;  %v345_v28 = vadd.f32 %v344_v22, %v248_v56 }
  0xbf   :  { %v319_v17 = vadd.f32 %v318_v16, %v258_v15  ;;  %v382_v19 = vpop.f32.mrf.mxu2 }
  0xc0   :  { %v383_v24 = vadd.f32 %v382_v19, %v258_v15  ;;  %395 = vst [vmem:[#allocation2 + $0x20] sm:$0xff] %v348_v26 }
  0xc1   :  { %397 = vst [vmem:[#allocation2 + $0x30] sm:$0xff] %v319_v17 }
  0xc2   :  { %399 = vst [vmem:[#allocation2 + $0x40] sm:$0xff] %v383_v24 }
  0xc3   :  { %392 = vst [vmem:[#allocation2 + $0x8] sm:$0xff] %v345_v28 }
  0xc5   :  { %v350_v32 = vpop.f32.mrf.mxu1  ;;  %v376_v20 = vpop.f32.mrf.mxu0 }
  0xc6   :  { %v321_v30 = vpop.f32.mrf.mxu3  ;;  %v351_v34 = vadd.f32 %v350_v32, %v258_v15  ;;  %v377_v35 = vadd.f32 %v376_v20, %v248_v56 }
  0xc7   :  { %v385_v31 = vpop.f32.mrf.mxu2  ;;  %v322_v33 = vadd.f32 %v321_v30, %v263_v29 }
  0xc8   :  { %v386_v36 = vadd.f32 %v385_v31, %v263_v29  ;;  %398 = vst [vmem:[#allocation2 + $0x38] sm:$0xff] %v351_v34 }
  0xc9   :  { %400 = vst [vmem:[#allocation2 + $0x48] sm:$0xff] %v322_v33 }
  0xca   :  { %393 = vst [vmem:[#allocation2 + $0x10] sm:$0xff] %v377_v35 }
  0xcb   :  { %402 = vst [vmem:[#allocation2 + $0x58] sm:$0xff] %v386_v36 }
  0xcd   :  { %v353_v6 = vpop.f32.mrf.mxu1 }
  0xce   :  { %v324_v0 = vpop.f32.mrf.mxu3  ;;  %v354_v39 = vadd.f32 %v353_v6, %v263_v29 }
  0xcf   :  { %v388_v2 = vpop.f32.mrf.mxu2  ;;  %v325_v37 = vadd.f32 %v324_v0, %v268_v1 }
  0xd0   :  { %v389_v38 = vadd.f32 %v388_v2, %v268_v1  ;;  %401 = vst [vmem:[#allocation2 + $0x50] sm:$0xff] %v354_v39 }
  0xd1   :  { %403 = vst [vmem:[#allocation2 + $0x60] sm:$0xff] %v325_v37 }
  0xd2   :  { %405 = vst [vmem:[#allocation2 + $0x70] sm:$0xff] %v389_v38 }
  0xd5   :  { %v356_v40 = vpop.f32.mrf.mxu1 }
  0xd6   :  { %v357_v41 = vadd.f32 %v356_v40, %v268_v1 }
  0xd8   :  { %404 = vst [vmem:[#allocation2 + $0x68] sm:$0xff] %v357_v41 }
  0xd9   :  { %418 = dma.vmem_to_hbm [thread:$0]  %s411_s21, 1920, %s413_s24, [#allocation3], %s506_s25, %s506_s25, %s507_s26  }
  0xda   :  { %500 = dma.done.wait [#allocation3], 1920  }
  0xdb   :  { %501 = vsyncadd [#allocation3], 4294965376 }
  0xdc   :  { %423 = vsyncpa [#allocation3], 1 }

</bundles_post_ra>
